<compile_context>
chip_gen: v7x
topology: tpu7x:2x2x1
jax: 0.10.0
libtpu: 0.0.40
codegen_flags: <defaults>
</compile_context>

<pallas_src>
import functools

import jax
import jax.numpy as jnp
from jax import lax
from jax.experimental import pallas as pl
from jax.experimental.pallas import tpu as pltpu

INF = 1.0 * 10000000.0   # matches the torch module
PB = 8                   # prompt rows per block = one vreg's worth of sublanes


# ------------------------------ small helpers ------------------------------
def _row_block(p):
    """Prompt-block size satisfying Mosaic's (8, 128) tiling rule."""
    if p % PB == 0:
        return PB, p
    if p < PB:
        return p, p               # block dim == full array dim is allowed
    return PB, PB * pl.cdiv(p, PB)


def _pad_rows(x, rows, fill=0):
    if x.shape[0] == rows:
        return x
    pad = jnp.full((rows - x.shape[0],) + x.shape[1:], fill, x.dtype)
    return jnp.concatenate([x, pad], axis=0)


def _pad_cols(x, cols, fill=0):
    if x.shape[1] == cols:
        return x
    pad = jnp.full((x.shape[0], cols - x.shape[1]), fill, x.dtype)
    return jnp.concatenate([x, pad], axis=1)


# --------- kernel A: chunked fused get_top_k + beam-candidate extraction ---------
def _chunk_topk_kernel(probs_ref, out_ref, work_ref, *, top_t, tv, tpad):
    """Per (prompt-block, vocab-chunk): top-`top_t` probs of this chunk.

    Lane-dense output (rows, 2*tpad) f32:
      lanes [0, tpad)      : top values of the chunk, descending (>= top_t: -1)
      lanes [tpad, 2*tpad) : chunk-LOCAL offsets of those values (as f32, exact
                             because offsets < tv)
    """
    rows = work_ref.shape[0]
    # Cast in-kernel (input may be bf16); working set lives in VMEM scratch so
    # vreg pressure stays flat regardless of top_t.
    work_ref[...] = probs_ref[...].astype(jnp.float32)

    v_iota_f = lax.broadcasted_iota(jnp.int32, (rows, tv), 1).astype(jnp.float32)
    lane = lax.broadcasted_iota(jnp.int32, (rows, tpad), 1)

    def body(t, carry):
        vals, idxs = carry
        w = work_ref[...]
        m = jnp.max(w, axis=-1, keepdims=True)                       # (rows, 1)
        # lowest-index tie-break; the index is needed anyway so the removal
        # drops exactly one entry (keeps duplicate values, as torch.topk does).
        idx = jnp.min(jnp.where(w == m, v_iota_f, jnp.float32(tv)),
                      axis=-1, keepdims=True)
        sel = lane == t
        vals = jnp.where(sel, m, vals)
        idxs = jnp.where(sel, idx, idxs)
        # probs >= 0, so -1 is a safe "removed" sentinel (values stay finite).
        work_ref[...] = jnp.where(v_iota_f == idx, jnp.float32(-1.0), w)
        return vals, idxs

    vals0 = jnp.full((rows, tpad), -1.0, jnp.float32)
    idxs0 = jnp.zeros((rows, tpad), jnp.float32)
    vals, idxs = lax.fori_loop(0, top_t, body, (vals0, idxs0))
    out_ref[:, :tpad] = vals
    out_ref[:, tpad:] = idxs


def topk_extract_pallas(probs, top_t, k_idx, *, chunk=4096):
    """Fused get_top_k + beam candidate extraction.

    Returns:
      top_t_vals: (P, top_t) global top-`top_t` probs per row (descending) -> Z
      top_k_vals: (P, k_idx) global top-`k_idx` probs per row (descending)
      top_k_tok : (P, k_idx) their token indices
    """
    P, V = probs.shape
    assert k_idx <= top_t
    tpad = 128 * pl.cdiv(top_t, 128)
    tv = max(128 * pl.cdiv(min(chunk, V), 128), tpad)    # chunk width (lanes)
    v_pad = tv * pl.cdiv(V, tv)
    n_chunks = v_pad // tv
    pb, p_pad = _row_block(P)

    x = _pad_cols(probs, v_pad)       # only copies when V % tv != 0
    x = _pad_rows(x, p_pad)           # only copies when P > 8 and P % 8 != 0

    out = pl.pallas_call(
        functools.partial(_chunk_topk_kernel, top_t=top_t, tv=tv, tpad=tpad),
        out_shape=jax.ShapeDtypeStruct((p_pad, n_chunks * 2 * tpad), jnp.float32),
        grid=(p_pad // pb, n_chunks),
        in_specs=[pl.BlockSpec((pb, tv), lambda p, c: (p, c))],
        out_specs=pl.BlockSpec((pb, 2 * tpad), lambda p, c: (p, c)),
        scratch_shapes=[pltpu.VMEM((pb, tv), jnp.float32)],
        compiler_params=pltpu.CompilerParams(
            dimension_semantics=("parallel", "parallel")),
    )(x)

    cands = out[:P].reshape(P, n_chunks, 2 * tpad)

    # Global top-top_t values (for Z): global winners are a subset of the
    # per-chunk winners, so a (n_chunks*top_t)-wide top_k is exact and tiny.
    top_t_vals = lax.top_k(
        cands[:, :, :top_t].reshape(P, n_chunks * top_t), top_t)[0]

    # Global top-k_idx values + token ids (restricted to per-chunk top-k_idx).
    kvals = cands[:, :, :k_idx].reshape(P, n_chunks * k_idx)
    kloc = cands[:, :, tpad:tpad + k_idx].astype(jnp.int32)
    ktok = (kloc + (jnp.arange(n_chunks, dtype=jnp.int32) * tv)[None, :, None]
            ).reshape(P, n_chunks * k_idx)
    top_k_vals, pos = lax.top_k(kvals, k_idx)
    top_k_tok = jnp.take_along_axis(ktok, pos, axis=-1)
    return top_t_vals, top_k_vals, top_k_tok


# -------------------- kernel B: superposition (mixing) matrix --------------------
def _superpose_kernel(tokens_ref, weights_ref, out_ref, *, n_drafts, tv):
    toks = tokens_ref[...]                                   # (rows, D) i32
    wts = weights_ref[...]                                   # (rows, D) f32, pre-normalized
    rows = out_ref.shape[0]
    base = pl.program_id(1) * tv
    v_iota = lax.broadcasted_iota(jnp.int32, (rows, tv), 1) + base
    acc = jnp.zeros((rows, tv), jnp.float32)
    for d in range(n_drafts):                                # D is tiny (e.g. 3)
        tok = toks[:, d:d + 1]
        w = wts[:, d:d + 1]
        acc = acc + w * (v_iota == tok).astype(jnp.float32)
    out_ref[...] = acc                                       # weights already sum to 1 per row


def superposition_matrix_pallas(tokens, norm_weights, vocab, *, chunk=8192):
    P, D = tokens.shape
    tv = 128 * pl.cdiv(min(chunk, vocab), 128)
    v_pad = tv * pl.cdiv(vocab, tv)
    pb, p_pad = _row_block(P)
    tok_p = _pad_rows(tokens.astype(jnp.int32), p_pad)
    w_p = _pad_rows(norm_weights.astype(jnp.float32), p_pad)
    out = pl.pallas_call(
        functools.partial(_superpose_kernel, n_drafts=D, tv=tv),
        out_shape=jax.ShapeDtypeStruct((p_pad, v_pad), jnp.float32),
        grid=(p_pad // pb, v_pad // tv),
        in_specs=[pl.BlockSpec((pb, D), lambda p, c: (p, 0)),
                  pl.BlockSpec((pb, D), lambda p, c: (p, 0))],
        out_specs=pl.BlockSpec((pb, tv), lambda p, c: (p, c)),
        compiler_params=pltpu.CompilerParams(
            dimension_semantics=("parallel", "parallel")),
    )(tok_p, w_p)
    return out[:P, :vocab]


# ---------------------------------- module port ----------------------------------
class SuperposeJax:
    """JAX/Pallas port of Superpose (smoothing=None path)."""

    def __init__(self, initial_tokens, eos_id, pad_id, vocab_size):
        self.n_prompts, self.n_drafts, self.seqlen = initial_tokens.shape
        self.vocab_size = vocab_size
        self.eos_id = eos_id
        self.pad_id = pad_id
        self.alive_seq = initial_tokens.astype(jnp.int32)
        self.fin_seq = initial_tokens.astype(jnp.int32)
        self.alive_log_probs = jnp.zeros((self.n_prompts, self.n_drafts), jnp.float32)
        self.fin_log_probs = jnp.full((self.n_prompts, self.n_drafts), -jnp.inf,
                                      jnp.float32)

    def forward(self, probs, still_prompt, is_first, cur_pos, n_token_sample,
                *, topk_chunk=4096, mix_chunk=8192):
        P, D, V = self.n_prompts, self.n_drafts, self.vocab_size
        S = self.seqlen
        K = 2 * D
        if K > n_token_sample:
            # TODO(synk): support the degenerate 2*n_drafts > n_token_sample case.
            raise ValueError("2 * n_drafts must be <= n_token_sample")

        # 1+2) fused get_top_k + log-prob + beam candidate extraction (Pallas).
        #      (the m=32000 masking in torch get_top_k is inert for k <= 32000)
        #      get_top_k renormalizes the kept top-n_token_sample probs, so
        #      log(new_probs[v]) = log(probs[v]) - log(Z), Z = sum of top probs.
        top_t_vals, top_k_vals, tok_topk = topk_extract_pallas(
            probs, n_token_sample, K, chunk=topk_chunk)
        z = jnp.sum(top_t_vals, axis=-1, keepdims=True)
        logp_topk = jnp.log(top_k_vals) - jnp.log(z)          # (P, K) filtered log-probs
        # curr[p,d,v] = alive[p,d] + logp[p,v]; the flat top-K over (d, v) can
        # only come from the per-row top-K tokens of logp, so search (D, K).
        cand = self.alive_log_probs[:, :, None] + logp_topk[:, None, :]   # (P, D, K)
        flat_vals, flat_pos = lax.top_k(cand.reshape(P, D * K), K)
        flat_beam = flat_pos // K
        flat_tok = jnp.take_along_axis(tok_topk, flat_pos % K, axis=-1)

        is_first_b = is_first.reshape(P, 1)
        topk_log_probs = jnp.where(is_first_b,
                                   self.alive_log_probs[:, 0:1] + logp_topk,
                                   flat_vals)
        topk_idx = jnp.where(is_first_b, tok_topk, flat_tok)
        topk_beam_id = flat_beam        # torch does not override beams for is_first

        # 3) tiny glue: gather sequences, place token, grow alive / finished beams.
        topk_seq = jnp.take_along_axis(
            self.alive_seq, jnp.broadcast_to(topk_beam_id[:, :, None], (P, K, S)),
            axis=1)
        topk_seq = topk_seq.at[:, :, cur_pos].set(topk_idx)
        topk_finished = topk_idx == self.eos_id

        # grow_alive
        ga = topk_log_probs + jnp.where(topk_finished, -INF, 0.0)
        new_alive_log_probs, a_idx = lax.top_k(ga, D)
        new_alive_seq = jnp.take_along_axis(
            topk_seq, jnp.broadcast_to(a_idx[:, :, None], (P, D, S)), axis=1)

        # grow_fin
        gf = topk_log_probs + jnp.where(topk_finished, 0.0, -INF)
        cat_seq = jnp.concatenate([self.fin_seq, topk_seq], axis=1)
        cat_lp = jnp.concatenate([self.fin_log_probs, gf], axis=1)
        new_fin_log_probs, f_idx = lax.top_k(cat_lp, D)
        new_fin_seq = jnp.take_along_axis(
            cat_seq, jnp.broadcast_to(f_idx[:, :, None], (P, D, S)), axis=1)

        # still_prompt gating
        spp = still_prompt.reshape(P, 1)
        sps = still_prompt.reshape(P, 1, 1)
        self.alive_seq = jnp.where(sps, self.alive_seq, new_alive_seq)
        self.alive_log_probs = jnp.where(spp, self.alive_log_probs,
                                         new_alive_log_probs)
        self.fin_seq = jnp.where(sps, self.fin_seq, new_fin_seq)
        self.fin_log_probs = jnp.where(spp, self.fin_log_probs, new_fin_log_probs)

        # 4) superposition mixing matrix over the vocab (Pallas).
        #    Pre-normalize the (P, D) weights (underflow-safe exp); the scatter
        #    preserves the row sum, so no vocab-wide reduction is needed.
        lp = self.alive_log_probs
        w = jnp.exp(lp - jnp.max(lp, axis=-1, keepdims=True))   # log_prob_to_prob
        w = w / jnp.sum(w, axis=-1, keepdims=True)
        tokens = self.alive_seq[:, :, cur_pos].reshape(P, D)
        token_weights = superposition_matrix_pallas(tokens, w, V, chunk=mix_chunk)
        return token_weights


# --------------------------- pure-JAX reference forward --------------------------
def _ref_forward(probs, alive_seq, alive_lp, fin_seq, fin_lp,
                 still_prompt, is_first, cur_pos, n_token_sample, eos_id):
    P, D, S = alive_seq.shape
    V = probs.shape[1]
    K = 2 * D
    # get_top_k (the m=32000 mask is inert)
    _, tidx = lax.top_k(probs, n_token_sample)
    mask = jnp.zeros((P, V), dtype=bool).at[jnp.arange(P)[:, None], tidx].set(True)
    newp = jnp.where(mask, probs, 0.0)
    newp = newp / jnp.sum(newp, axis=-1, keepdims=True)
    logp = jnp.log(newp)
    curr = alive_lp[:, :, None] + logp[:, None, :]
    tl, ti = lax.top_k(curr.reshape(P, D * V), K)
    beam = ti // V
    tok = ti % V
    ftl, fti = lax.top_k(logp, K)
    tok = jnp.where(is_first[:, None], fti, tok)
    tl = jnp.where(is_first[:, None], alive_lp[:, 0:1] + ftl, tl)
    seq = jnp.take_along_axis(alive_seq,
                              jnp.broadcast_to(beam[:, :, None], (P, K, S)), axis=1)
    seq = seq.at[:, :, cur_pos].set(tok)
    fin = tok == eos_id
    ga = tl + jnp.where(fin, -INF, 0.0)
    nal, ai = lax.top_k(ga, D)
    nas = jnp.take_along_axis(seq, jnp.broadcast_to(ai[:, :, None], (P, D, S)), axis=1)
    spp = still_prompt[:, None]
    sps = still_prompt[:, None, None]
    alive_seq = jnp.where(sps, alive_seq, nas)
    alive_lp = jnp.where(spp, alive_lp, nal)
    toks = alive_seq[:, :, cur_pos]
    w = jnp.exp(alive_lp)
    mix = jnp.zeros((P, V), jnp.float32).at[jnp.arange(P)[:, None], toks].add(w)
    mix = mix / jnp.sum(mix, axis=-1, keepdims=True)
    return mix, alive_seq, alive_lp


# -------------------------------------- demo --------------------------------------
if __name__ == "__main__":
    P, D, V, S = 2, 3, 2048, 16          # n_prompts, n_drafts, vocab, max seqlen
    cur_pos = 4
    n_token_sample = 8
    eos_id, pad_id = 2, 0

    key = jax.random.PRNGKey(0)
    k1, k2 = jax.random.split(key, 2)

    # initial_tokens: same prompt replicated across drafts, padded to seqlen
    prompt = jax.random.randint(k1, (P, 1, cur_pos), 3, V, dtype=jnp.int32)
    initial_tokens = jnp.concatenate(
        [jnp.broadcast_to(prompt, (P, D, cur_pos)),
         jnp.full((P, D, S - cur_pos), pad_id, jnp.int32)], axis=-1)

    sp = SuperposeJax(initial_tokens, eos_id=eos_id, pad_id=pad_id, vocab_size=V)
    # prompt 1 pretends to already have distinct beam scores (not first step)
    sp.alive_log_probs = sp.alive_log_probs.at[1].set(
        jnp.array([-0.1, -0.7, -1.3], jnp.float32))

    logits = jax.random.normal(k2, (P, V), jnp.float32) * 3.0
    probs = jax.nn.softmax(logits, axis=-1)

    still_prompt = jnp.array([False, False])
    is_first = jnp.array([True, False])

    # snapshot pre-forward state for the reference
    alive_seq0, alive_lp0 = sp.alive_seq, sp.alive_log_probs
    fin_seq0, fin_lp0 = sp.fin_seq, sp.fin_log_probs

    # small chunk sizes so the demo exercises the multi-chunk (pipelined) path
    token_weights = sp.forward(probs, still_prompt, is_first, cur_pos,
                               n_token_sample, topk_chunk=512, mix_chunk=1024)
    token_weights = jax.block_until_ready(token_weights)

    assert token_weights.shape == (P, V)
    assert bool(jnp.all(jnp.isfinite(token_weights)))
    row_sums = jnp.sum(token_weights, axis=-1)
    assert bool(jnp.all(jnp.abs(row_sums - 1.0) < 1e-4))

    ref_mix, ref_alive_seq, ref_alive_lp = _ref_forward(
        probs, alive_seq0, alive_lp0, fin_seq0, fin_lp0,
        still_prompt, is_first, cur_pos, n_token_sample, eos_id)
    ref_mix = jax.block_until_ready(ref_mix)

    assert bool(jnp.max(jnp.abs(token_weights - ref_mix)) < 1e-4)
    assert bool(jnp.allclose(sp.alive_log_probs, ref_alive_lp, atol=1e-4, rtol=0))
    assert bool(jnp.array_equal(sp.alive_seq, ref_alive_seq))

    jax.block_until_ready(sp.alive_seq)
    print("KERNEL_OK")
</pallas_src>

<mosaic_0001>
module attributes {stable_mosaic.version = 11 : i64} {
  func.func @_chunk_topk_kernel(%arg0: i32, %arg1: i32, %arg2: memref<2x512xf32, #tpu.memory_space<vmem>>, %arg3: memref<2x256xf32, #tpu.memory_space<vmem>>, %arg4: memref<2x512xf32, #tpu.memory_space<vmem>>) attributes {dimension_semantics = [#tpu.dimension_semantics<parallel>, #tpu.dimension_semantics<parallel>], iteration_bounds = array<i64: 1, 4>, scalar_prefetch = 0 : i64, scratch_operands = 1 : i64, tpu.core_type = #tpu.core_type<tc>, window_params = [{transform_indices = @transform_0, window_bounds = array<i64: 2, 512>}, {transform_indices = @transform_1, window_bounds = array<i64: 2, 256>}]} {
    %c0 = arith.constant 0 : index
    %c0_0 = arith.constant 0 : index
    %0 = vector.load %arg2[%c0, %c0_0] : memref<2x512xf32, #tpu.memory_space<vmem>>, vector<2x512xf32>
    %c0_1 = arith.constant 0 : index
    %c0_2 = arith.constant 0 : index
    %1 = vector.load %arg4[%c0_1, %c0_2] : memref<2x512xf32, #tpu.memory_space<vmem>>, vector<2x512xf32>
    tpu.vector_store %arg4[%c0_1, %c0_2], %0 {strides = array<i32>} : memref<2x512xf32, #tpu.memory_space<vmem>>, vector<2x512xf32>,
    %2 = tpu.iota {dimensions = array<i32: 1>} : vector<2x512xi32>
    %3 = arith.sitofp %2 : vector<2x512xi32> to vector<2x512xf32>
    %4 = tpu.iota {dimensions = array<i32: 1>} : vector<2x128xi32>
    %cst = arith.constant -1.000000e+00 : f32
    %5 = vector.broadcast %cst : f32 to vector<2x128xf32>
    %cst_3 = arith.constant 0.000000e+00 : f32
    %6 = vector.broadcast %cst_3 : f32 to vector<2x128xf32>
    %c0_i32 = arith.constant 0 : i32
    %c8_i32 = arith.constant 8 : i32
    %7 = arith.addi %c0_i32, %c8_i32 : i32
    %c1_i32 = arith.constant 1 : i32
    %8:2 = scf.for %arg5 = %c0_i32 to %7 step %c1_i32 iter_args(%arg6 = %5, %arg7 = %6) -> (vector<2x128xf32>, vector<2x128xf32>)  : i32 {
      %c0_8 = arith.constant 0 : index
      %c0_9 = arith.constant 0 : index
      %11 = vector.load %arg4[%c0_8, %c0_9] : memref<2x512xf32, #tpu.memory_space<vmem>>, vector<2x512xf32>
      %cst_10 = arith.constant dense<0xFF800000> : vector<2xf32>
      %12 = vector.multi_reduction <maximumf>, %11, %cst_10 [1] : vector<2x512xf32> to vector<2xf32>
      %13 = vector.shape_cast %12 : vector<2xf32> to vector<2x1xf32>
      %14 = vector.broadcast %13 : vector<2x1xf32> to vector<2x512xf32>
      %15 = arith.cmpf oeq, %11, %14 : vector<2x512xf32>
      %cst_11 = arith.constant 5.120000e+02 : f32
      %16 = vector.broadcast %cst_11 : f32 to vector<2x512xf32>
      %17 = arith.select %15, %3, %16 : vector<2x512xi1>, vector<2x512xf32>
      %cst_12 = arith.constant dense<0x7F800000> : vector<2xf32>
      %18 = vector.multi_reduction <minimumf>, %17, %cst_12 [1] : vector<2x512xf32> to vector<2xf32>
      %19 = vector.shape_cast %18 : vector<2xf32> to vector<2x1xf32>
      %20 = vector.broadcast %arg5 : i32 to vector<2x128xi32>
      %21 = arith.cmpi eq, %4, %20 : vector<2x128xi32>
      %22 = vector.shape_cast %13 : vector<2x1xf32> to vector<2x1xf32>
      %23 = vector.broadcast %22 : vector<2x1xf32> to vector<2x128xf32>
      %24 = arith.select %21, %23, %arg6 : vector<2x128xi1>, vector<2x128xf32>
      %25 = vector.shape_cast %19 : vector<2x1xf32> to vector<2x1xf32>
      %26 = vector.broadcast %25 : vector<2x1xf32> to vector<2x128xf32>
      %27 = arith.select %21, %26, %arg7 : vector<2x128xi1>, vector<2x128xf32>
      %28 = vector.broadcast %19 : vector<2x1xf32> to vector<2x512xf32>
      %29 = arith.cmpf oeq, %3, %28 : vector<2x512xf32>
      %cst_13 = arith.constant -1.000000e+00 : f32
      %30 = vector.broadcast %cst_13 : f32 to vector<2x512xf32>
      %31 = arith.select %29, %30, %11 : vector<2x512xi1>, vector<2x512xf32>
      %c0_14 = arith.constant 0 : index
      %c0_15 = arith.constant 0 : index
      %32 = vector.load %arg4[%c0_14, %c0_15] : memref<2x512xf32, #tpu.memory_space<vmem>>, vector<2x512xf32>
      tpu.vector_store %arg4[%c0_14, %c0_15], %31 {strides = array<i32>} : memref<2x512xf32, #tpu.memory_space<vmem>>, vector<2x512xf32>,
      scf.yield %24, %27 : vector<2x128xf32>, vector<2x128xf32>
    }
    %c8_i32_4 = arith.constant 8 : i32
    %c0_5 = arith.constant 0 : index
    %c0_6 = arith.constant 0 : index
    %9 = vector.load %arg3[%c0_5, %c0_6] : memref<2x256xf32, #tpu.memory_space<vmem>>, vector<2x128xf32>
    tpu.vector_store %arg3[%c0_5, %c0_6], %8#0 {strides = array<i32>} : memref<2x256xf32, #tpu.memory_space<vmem>>, vector<2x128xf32>,
    %c0_7 = arith.constant 0 : index
    %c128 = arith.constant 128 : index
    %10 = vector.load %arg3[%c0_7, %c128] : memref<2x256xf32, #tpu.memory_space<vmem>>, vector<2x128xf32>
    tpu.vector_store %arg3[%c0_7, %c128], %8#1 {strides = array<i32>} : memref<2x256xf32, #tpu.memory_space<vmem>>, vector<2x128xf32>,
    return
  }
  func.func @transform_0(%arg0: i32, %arg1: i32) -> (i32, i32) {
    %c0_i32 = arith.constant 0 : i32
    return %arg0, %arg1 : i32, i32
  }
  func.func @transform_1(%arg0: i32, %arg1: i32) -> (i32, i32) {
    %c0_i32 = arith.constant 0 : i32
    return %arg0, %arg1 : i32, i32
  }
}

</mosaic_0001>

<bundles_post_ra>
// kernel: tpu_custom_call.1
= control target key start
LH: loop header
LB: loop body
LE: loop exit
PB: predicated region body
PF: predicated region fallthrough
CT: control target
= control target key end

     0   :  { %6 = vsyncpa [#allocation4], 0  ;;  %s915_s0 = inlined_call_operand.hbm [shape: f32[2,2048], index: 0, kind: input, shape index: {}]   ;;  %s916_s1 = inlined_call_operand.hbm [shape: f32[2,1024], index: 1, kind: output, shape index: {}]  }
   0x1   :  { %8 = vsyncpa [#allocation4 + $0x1], 0 }
   0x2   :  { %9 = vsyncpa [#allocation5], 0 }
   0x3   :  { %11 = vsyncpa [#allocation5 + $0x1], 0  ;;  %s676_s6 = smov 0   ;;  %s678_s7 = smov 0  }
   0x4   :  { %s680_s8 = smov 0   ;;  %s682_s9 = smov 0  }
   0x5   :  { %s684_s10 = smov 0   ;;  %s686_s11 = smov 0  }
   0x6 LB: > { %s418_s12 = sadd.s32 4294967295, %s648_s11   ;;  %s419_s13 = sadd.s32 4294967294, %s648_s11   ;;  %s648_s11 = sphi %s686_s11, %s17_s11   ;;  %s644_s10 = sphi %s684_s10, %s935_s10   ;;  %s640_s9 = sphi %s682_s9, %s934_s9   ;;  %s636_s8 = sphi %s680_s8, %s933_s8   ;;  %s632_s7 = sphi %s678_s7, %s932_s7   ;;  %s628_s6 = sphi %s676_s6, %s931_s6  }
   0x7   : > { %s26_s14 = sadd.s32 1, %s644_s10  ;;  %s38_s15 = sadd.s32 1, %s636_s8 }
   0x8   : > { %p27_p0 = scmp.ge.s32.totalorder %s26_s14, 4  ;;  %p45_p1 = scmp.ne.s32.totalorder %s636_s8, %s632_s7 }
   0x9   : > { %p46_p2 = scmp.eq.s32.totalorder %s648_s11, 0  ;;  %p51_p3 = scmp.ne.s32.totalorder %s632_s7, %s628_s6 }
   0xa   : > { %s937_s14 = smov (%p27_p0, %s26_s14), 0  ;;  %p52_p5 = scmp.eq.s32.totalorder %s418_s12, 0 }
   0xb   : > { %p717_p4 = por %p46_p2, %p45_p1  ;;  %s34_s17 = ssub.s32 %s644_s10, %s937_s14 }
   0xc   : > { %p77_p6 = scmp.eq.s32.totalorder %s418_s12, 3  ;;  %p36_p7 = scmp.eq.s32.totalorder %s34_s17, 0 }
   0xd   : > { %p723_p8 = por %p52_p5, %p51_p3  ;;  %p83_p10 = scmp.eq.s32.totalorder %s419_s13, 3 }
   0xe   : > { %p727_p9 = por %p77_p6, %p45_p1  ;;  %p447_p12 = scmp.lt.s32.totalorder %s648_s11, 4 }
   0xf   : > { %s732_s20 = scalar_select %p36_p7, %s636_s8, %s38_s15  }
  0x10   : > { %s920_s19 = scalar_select %p727_p9, 1, 0 }
  0x11   : > { %p734_p11 = por %p83_p10, %p51_p3  ;;  %s103_s22 = sand.u32 1, %s636_s8  }
  0x12   : > { %s422_s23 = sshll.u32 %s103_s22, 3  ;;  %s433_s24 = sshll.u32 %s644_s10, 7 }
  0x13   : > { %s921_s21 = scalar_select %p734_p11, 1, 0 }
  0x14   : > { %s744_s27 = scalar_lea.hbm %s915_s0, %s433_s24  ;;  %s107_s28 = scalar_lea.vmem [#allocation3], %s422_s23 }
  0x15   : > { %s117_s29 = sshll.u32 %s107_s28, 4  ;;  %p750_p13 = pnand %p447_p12, %p717_p4  ;;  %s746_s29 = int_to_ptr.vmem [resolvable:$true] %s117_s29 }
  0x16   : > { %s104_s2 = scalar_lea.sflag [#allocation4], %s103_s22  ;;  %s524_s3 = scalar_lea.hbm %s744_s27, 128 }
  0x17   : > { %p525_p2 = scmp.ne.s32.totalorder %s744_s27, %s524_s3  ;;  %p526_p3 = pneg %p750_p13 }
  0x18   : > { %s529_s12 = scalar_lea.hbm %s915_s0, 512  ;;  %p530_p4 = scmp.lt.u32.totalorder %s744_s27, %s915_s0 }
  0x19   : > { %p527_p5 = pnand %p526_p3, %p525_p2  ;;  %p531_p7 = scmp.lt.u32.totalorder %s529_s12, %s524_s3 }
  0x1a   : > { %p533_p12 = scmp.lt.u32.totalorder %s524_s3, %s744_s27 }
  0x1b   : > { %p528_p6 = pneg %p527_p5  ;;  %p532_p10 = por %p531_p7, %p530_p4 }
  0x1d   : > { %p534_p0 = por %p533_p12, %p532_p10 }
  0x1f   : > { %p535_p1 = pnand %p534_p0, %p528_p6 }
  0x21   : > { %538 = shalt.err (!%p535_p1)
}
  0x22   : > { %s539_s16 = scalar_lea.vmem %s746_s29, 128  ;;  %s662_s17 = smov [#allocation3]  }
  0x23   : > { %p540_p2 = scmp.ne.s32.totalorder %s746_s29, %s539_s16  ;;  %s544_s22 = sshll.u32 %s662_s17, 4  ;;  %s545_s22 = int_to_ptr.vmem [resolvable:$false] %s544_s22 }
  0x24   : > { %s546_s23 = scalar_lea.vmem %s545_s22, 256  ;;  %p547_p9 = scmp.lt.s32.totalorder %s746_s29, %s545_s22 }
  0x25   : > { %p542_p5 = pnand %p540_p2, %p526_p3  ;;  %p548_p4 = scmp.lt.s32.totalorder %s546_s23, %s539_s16 }
  0x27   : > { %p543_p11 = pneg %p542_p5  ;;  %p549_p7 = por %p548_p4, %p547_p9 }
  0x29   : > { %p550_p10 = pnand %p549_p7, %p543_p11 }
  0x2b   : > { %553 = shalt.err (!%p550_p10)
}
  0x2c   : > { %442 = dma.hbm_to_vmem [thread:$0]  (!%p750_p13), %s744_s27, 128, %s746_s29, %s104_s2  }
  0x2d   : > { %p923_p0 = scmp.lt.s32.totalorder %s648_s11, 5  ;;  %p924_p1 = scmp.ge.s32.totalorder %s648_s11, 1 }
  0x2f   : > { %p123_p3 = pnand %p924_p1, %p923_p0 }
  0x30   : > { %s786_s24 = sand.u32 (!%p123_p3), 1, %s632_s7  }
  0x31   : > { %126 = sbr.rel (%p123_p3) target bundleno = 402 (0x192), region = 24  ;;  %s426_s25 = sshll.u32 (!%p123_p3), %s786_s24, 3 }
  0x32   : > { %s129_s26 = scalar_lea.sflag (!%p123_p3), [#allocation4], %s786_s24  ;;  %s132_s28 = scalar_lea.vmem (!%p123_p3), [#allocation3], %s426_s25 }
  0x38   : > { %619 = dma.done.wait (%p723_p8), %s129_s26, 128  }
  0x39   : > { %621 = vsyncadd (%p723_p8), %s129_s26, 4294967168  ;;  %s427_s27 = sshll.u32 %s786_s24, 2  ;;  %v155_v0 = vlaneseq  ;;  %v153_v9 = vld [vmem:[%s132_s28] sm:$0xff]  ;;  %v813_v10 = vmov 0.0   ;;  %v815_v11 = vmov -1.0   ;;  %s817_s29 = smov 0  }
  0x3a   : > { %154 = vst [vmem:[#allocation2] sm:$0xff] %v153_v9  ;;  %s811_s18 = scalar_lea.vmem [#allocation6], %s427_s27 }
  0x3b   : > { %v796_v1 = vand.u32 127, %v155_v0 }
  0x3d   : > { %v799_v2 = vadd.s32 128, %v796_v1  ;;  %v802_v3 = vadd.s32 256, %v796_v1  ;;  %v805_v4 = vadd.s32 384, %v796_v1  ;;  %v160_v5 = vcvt.s32.f32 %v796_v1 }
  0x3f   : > { %v161_v6 = vcvt.s32.f32 %v799_v2  ;;  %v162_v7 = vcvt.s32.f32 %v802_v3  ;;  %v163_v8 = vcvt.s32.f32 %v805_v4 }
  0x40 LB: >> { %v663_v13 = vmov 1983009808   ;;  %v179_v15 = vshrl.u32 %v155_v0, 7  ;;  %vm195_vm0 = vcmask 1041408   ;;  %v664_v30 = vmov 269488144   ;;  %s660_s29 = sphi %s817_s29, %s169_s29   ;;  %v656_v11 = vphi %v815_v11, %v928_v11   ;;  %v652_v10 = vphi %v813_v10, %v927_v10  }
  0x41   : >> { %v172_v12 = vld [vmem:[#allocation2] sm:$0xff]  ;;  %v176_v14 = vunpack.c.l.s4 %v663_v13  ;;  %v207_v31 = vunpack.c.l.s4 %v664_v30  ;;  %v219_v32 = vcombine.low %v160_v5, %v161_v6  ;;  %v220_v33 = vcombine.low %v162_v7, %v163_v8 }
  0x42   : >> { %v174_v16 = vcombine.high %v172_v12, %v172_v12  ;;  %v269_v35 = vstv %s660_s29  ;;  %s169_s29 = sadd.s32 1, %s660_s29  }
  0x43   : >> { %v177_v17 = vunpack.c.0.s8 %v176_v14  ;;  %v208_v34 = vunpack.c.0.s8 %v207_v31  ;;  %vm839_vm1 = vcmp.eq.s32.totalorder %v796_v1, %v269_v35  ;;  %p166_p8 = scmp.ge.s32.totalorder %s169_s29, 8  }
  0x44   : > { %s434_s30 = sshll.u32 (%p166_p8), %s640_s9, 6  ;;  %s323_s5 = sshll.u32 (%p166_p8), %s811_s18, 4  ;;  %s324_s5 = int_to_ptr.vmem [resolvable:$true] %s323_s5 }
  0x45   : >> { %v180_v18 = vsub.s32 %v177_v17, %v179_v15  ;;  %v211_v38 = vsub.s32 %v208_v34, %v179_v15  ;;  %s872_s4 = scalar_lea.hbm (%p166_p8), %s916_s1, %s434_s30  ;;  %s307_s12 = scalar_lea.sflag (%p166_p8), [#allocation5], %s786_s24 }
  0x46   : > { %s554_s13 = scalar_lea.vmem (%p166_p8), %s324_s5, 64  ;;  %p929_p11 = scmp.ne.s32.totalorder (%p166_p8), %s920_s19, 0 }
  0x47   : >> { %v181_v19 = vrot.slane %v172_v12, %v180_v18  ;;  %v188_v20 = vrot.slane %v174_v16, %v180_v18  ;;  %v227_v36 = vrot.slane %v219_v32, %v180_v18  ;;  %v234_v37 = vrot.slane %v220_v33, %v180_v18  ;;  %p555_p9 = scmp.ne.s32.totalorder (%p166_p8), %s324_s5, %s554_s13  ;;  %s665_s15 = smov (%p166_p8), [#allocation6]  }
  0x48   : > { %s558_s16 = sshll.u32 (%p166_p8), %s665_s15, 4  ;;  %s559_s16 = int_to_ptr.vmem [resolvable:$false] %s558_s16 }
  0x49   : >> { %v189_v21 = vcombine.high %v181_v19, %v181_v19  ;;  %v190_v22 = vcombine.high %v188_v20, %v188_v20  ;;  %v196_v23 = vsel %vm195_vm0, %v181_v19, -inf  ;;  %v198_v24 = vsel %vm195_vm0, %v188_v20, -inf  ;;  %p556_p13 = pnand (%p166_p8), %p555_p9, %p929_p11  ;;  %s560_s17 = scalar_lea.vmem (%p166_p8), %s559_s16, 128 }
  0x4a   : >> { %v235_v40 = vcombine.low %v227_v36, %v234_v37  ;;  %p561_p12 = scmp.lt.s32.totalorder (%p166_p8), %s324_s5, %s559_s16  ;;  %p562_p2 = scmp.lt.s32.totalorder (%p166_p8), %s560_s17, %s554_s13 }
  0x4b   : >> { %v197_v25 = vsel %vm195_vm0, %v189_v21, -inf  ;;  %v199_v26 = vsel %vm195_vm0, %v190_v22, -inf  ;;  %p557_p6 = pneg (%p166_p8), %p556_p13 }
  0x4c   : >> { %v200_v27 = vmax.f32 %v196_v23, %v197_v25  ;;  %v201_v28 = vmax.f32 %v198_v24, %v199_v26  ;;  %p563_p5 = por (%p166_p8), %p562_p2, %p561_p12 }
  0x4e   : >> { %v202_v29 = vmax.f32 %v200_v27, %v201_v28  ;;  %p564_p4 = pnand (%p166_p8), %p563_p5, %p557_p6 }
  0x50   : >> { %203 = vmax.xlane.f32.xlu0 %v202_v29 }
  0xdd   : >> { %v204_v41 = vpop.xlane.xlu0 %203 }
  0xde   : >> { %v212_v42 = vrot.slane %v204_v41, %v211_v38  ;;  %v271_v43 = vsel %vm839_vm1, %v204_v41, %v656_v11  }
  0xdf   : > { %304 = vst [vmem:[%s811_s18] sm:$0x3] (%p166_p8), %v271_v43 }
  0xe0   : >> { %vm214_vm2 = vcmp.eq.f32.partialorder %v172_v12, %v212_v42 }
  0xe1   : >> { %v237_v44 = vsel %vm214_vm2, %v235_v40, 512.0 }
  0xe2   : >> { %v239_v45 = vcombine.high %v237_v44, %v237_v44  ;;  %v246_v46 = vrot.slane %v237_v44, %v180_v18 }
  0xe4   : >> { %v253_v47 = vrot.slane %v239_v45, %v180_v18  ;;  %v254_v48 = vcombine.high %v246_v46, %v246_v46  ;;  %v260_v51 = vsel %vm195_vm0, %v246_v46, inf }
  0xe6   : >> { %v255_v49 = vcombine.high %v253_v47, %v253_v47  ;;  %v261_v50 = vsel %vm195_vm0, %v254_v48, inf  ;;  %v262_v52 = vsel %vm195_vm0, %v253_v47, inf }
  0xe7   : >> { %v264_v54 = vmin.f32 %v260_v51, %v261_v50 }
  0xe8   : >> { %v263_v53 = vsel %vm195_vm0, %v255_v49, inf }
  0xe9   : >> { %v265_v55 = vmin.f32 %v262_v52, %v263_v53 }
  0xeb   : >> { %v266_v56 = vmin.f32 %v264_v54, %v265_v55 }
  0xed   : >> { %267 = vmin.xlane.f32.xlu0 %v266_v56 }
 0x17a   : >> { %v268_v57 = vpop.xlane.xlu0 %267 }
 0x17b   : >> { %v272_v58 = vsel %vm839_vm1, %v268_v57, %v652_v10   ;;  %vm273_vm3 = vcmp.eq.f32.partialorder %v160_v5, %v268_v57  ;;  %vm274_vm4 = vcmp.eq.f32.partialorder %v161_v6, %v268_v57  ;;  %vm275_vm5 = vcmp.eq.f32.partialorder %v162_v7, %v268_v57 }
 0x17c   : >> { %vm276_vm6 = vcmp.eq.f32.partialorder %v163_v8, %v268_v57  ;;  %v277_v59 = vsel %vm273_vm3, -1.0, %v181_v19  ;;  %v278_v60 = vsel %vm274_vm4, -1.0, %v189_v21  ;;  %v279_v61 = vsel %vm275_vm5, -1.0, %v188_v20  ;;  %305 = vst [vmem:[%s811_s18 + $0x2] sm:$0x3] (%p166_p8), %v272_v58 }
 0x17d   : >> { %v280_v62 = vsel %vm276_vm6, -1.0, %v190_v22  ;;  %v285_v63 = vcombine.low %v277_v59, %v278_v60 }
 0x17e   : >> { %v286_v9 = vcombine.low %v279_v61, %v280_v62  ;;  %168 = sbr.rel (!%p166_p8) target bundleno = 64 (0x40), region = 76 }
 0x17f   : >> { %v293_v11 = vrot.slane %v285_v63, %v180_v18 }
 0x180   : >> { %v300_v10 = vrot.slane %v286_v9, %v180_v18 }
 0x182   : >> { %v301_v12 = vcombine.low %v293_v11, %v300_v10  ;;  %v927_v10 = vmov %v272_v58  ;;  %v928_v11 = vmov %v271_v43 }
 0x184   : >> { %303 = vst [vmem:[#allocation2] sm:$0xff] %v301_v12 }
 0x185   : > { %567 = shalt.err (!%p564_p4)
}
 0x186   : > { %s568_s9 = scalar_lea.hbm %s872_s4, 64  ;;  %s572_s24 = scalar_lea.hbm %s916_s1, 256 }
 0x187   : > { %p569_p7 = scmp.ne.s32.totalorder %s872_s4, %s568_s9  ;;  %p573_p1 = scmp.lt.u32.totalorder %s872_s4, %s916_s1 }
 0x188   : > { %p574_p3 = scmp.lt.u32.totalorder %s572_s24, %s568_s9  ;;  %p576_p9 = scmp.lt.u32.totalorder %s568_s9, %s872_s4 }
 0x189   : > { %p570_p10 = pnand %p569_p7, %p929_p11 }
 0x18a   : > { %p575_p8 = por %p574_p3, %p573_p1 }
 0x18b   : > { %p571_p0 = pneg %p570_p10 }
 0x18c   : > { %p577_p13 = por %p576_p9, %p575_p8 }
 0x18e   : > { %p578_p6 = pnand %p577_p13, %p571_p0 }
 0x190   : > { %581 = shalt.err (!%p578_p6)
}
 0x191   : > { %437 = dma.vmem_to_hbm [thread:$0]  (%p929_p11), %s324_s5, 64, %s872_s4, %s307_s12  }
 0x192 PF: > { %p448_p12 = scmp.ge.s32.totalorder %s648_s11, 2  ;;  %s335_s28 = sand.u32 1, %s628_s6  }
 0x193   : > { %p930_p2 = scmp.ne.s32.totalorder %s921_s21, 0  ;;  %s336_s27 = scalar_lea.sflag [#allocation5], %s335_s28 }
 0x195   : > { %p444_p5 = pnand %p448_p12, %p930_p2 }
 0x197   : > { %623 = dma.done.wait (!%p444_p5), %s336_s27, 64  }
 0x198   : > { %625 = vsyncadd (!%p444_p5), %s336_s27, 4294967232  ;;  %s17_s11 = sadd.s32 1, %s648_s11   ;;  %s931_s6 = smov %s632_s7 }
 0x199   : > { %p14_p4 = scmp.ge.s32.totalorder %s17_s11, 6   ;;  %s932_s7 = smov %s636_s8 }
 0x19a   : > { %s933_s8 = smov %s732_s20  ;;  %s934_s9 = smov %s644_s10 }
 0x19b   : > { %s935_s10 = smov %s937_s14  ;;  %16 = sbr.rel (!%p14_p4) target bundleno = 6 (0x6), region = 87 }
 0x1a2   :  { %341 = vsyncpa [#allocation4], 1 }
 0x1a3   :  { %343 = vsyncpa [#allocation4 + $0x1], 1 }
 0x1a4   :  { %344 = vsyncpa [#allocation5], 1 }
 0x1a5   :  { %346 = vsyncpa [#allocation5 + $0x1], 1 }

</bundles_post_ra>
